<compile_context>
chip_gen: v5e
topology: v5e:2x2
jax: 0.10.0
libtpu: 0.0.40
codegen_flags: <defaults>
</compile_context>

<pallas_src>
import functools

import jax
import jax.numpy as jnp
from jax import lax
from jax.experimental import pallas as pl
from jax.experimental.pallas import tpu as pltpu


def _deepsets_kernel(x_ref, w1_ref, w2_ref, p_ref, o_ref, *, eps):
    """x_ref: (BN, c0) f32.  w1_ref: (c0, c0) bf16.  w2_ref: (c0, c1) bf16.

    p_ref: (8, c0) f32 parameter slab, rows (zero padded on the right):
      0: gamma1 (c0)   1: beta1 (c0)
      2: gamma2 (c1)   3: beta2 (c1)
      4: gamma3 (1)    5: beta3 (1)
      6: fc_3 weight as a row (c1)
    o_ref: (BN, 1) f32.
    """
    c1 = w2_ref.shape[1]
    f32 = jnp.float32
    bf16 = jnp.bfloat16

    def bn_relu(y, g, bt):
        # One-sweep batch statistics (biased variance, as torch BN training).
        mu = jnp.mean(y, axis=0, keepdims=True)
        var = jnp.mean(y * y, axis=0, keepdims=True) - mu * mu
        # BN affine folded to a single per-column scale/shift.
        scale = g * lax.rsqrt(var + eps)
        shift = bt - mu * scale
        return jnp.maximum(y * scale + shift, 0.0)

    x = x_ref[...]

    # Layer 1: (BN,c0)@(c0,c0) — bf16 operands on the MXU, f32 accumulation.
    # (Linear bias dropped: it cancels exactly under the batch-mean subtract.)
    y1 = jnp.dot(x.astype(bf16), w1_ref[...], preferred_element_type=f32)
    h1 = bn_relu(y1, p_ref[0:1, :], p_ref[1:2, :])

    # Layer 2: (BN,c0)@(c0,c1).
    y2 = jnp.dot(h1.astype(bf16), w2_ref[...], preferred_element_type=f32)
    h2 = bn_relu(y2, p_ref[2:3, :c1], p_ref[3:4, :c1])

    # Layer 3: output width 1 -> VPU multiply + cross-lane reduction (f32)
    # instead of a 1-column MXU matmul.
    w3_row = p_ref[6:7, :c1]
    y3 = jnp.sum(h2 * w3_row, axis=-1, keepdims=True)
    h3 = bn_relu(y3, p_ref[4:5, 0:1], p_ref[5:6, 0:1])

    o_ref[...] = h3


def deep_sets_block_siamese(x, params, *, eps=1e-5):
    """x: (b, n, c0).  params: w1 (c0,c0), w2 (c0,c1), w3 (c1,1), plus per-layer
    g*/bt* (BatchNorm affine).  Linear biases b1/b2/b3 may be present but are
    mathematically redundant for the output and are ignored.  Returns (b,n,1).
    """
    b, n, c0 = x.shape
    bn = b * n
    c1 = params["w2"].shape[1]
    c2 = params["w3"].shape[1]
    if c2 != 1:
        # TODO(synk): generalize the packed-slab / lane-reduction path to c2>1.
        raise NotImplementedError("kernel specialized for channels[2] == 1")
    assert c1 <= c0

    x2d = x.reshape(bn, c0).astype(jnp.float32)

    # Weights stored as bf16 in HBM (dominant DMA bytes); f32 accumulation on
    # the MXU inside the kernel.
    w1 = params["w1"].astype(jnp.bfloat16)
    w2 = params["w2"].astype(jnp.bfloat16)

    # Pack all small per-channel params into one sublane-aligned f32 slab.
    slab = jnp.zeros((8, c0), jnp.float32)
    slab = slab.at[0, :c0].set(params["g1"].astype(jnp.float32))
    slab = slab.at[1, :c0].set(params["bt1"].astype(jnp.float32))
    slab = slab.at[2, :c1].set(params["g2"].astype(jnp.float32))
    slab = slab.at[3, :c1].set(params["bt2"].astype(jnp.float32))
    slab = slab.at[4, 0].set(params["g3"].astype(jnp.float32)[0])
    slab = slab.at[5, 0].set(params["bt3"].astype(jnp.float32)[0])
    slab = slab.at[6, :c1].set(params["w3"].astype(jnp.float32)[:, 0])

    def full(shape):
        return pl.BlockSpec(shape, lambda i: (0,) * len(shape))

    out = pl.pallas_call(
        functools.partial(_deepsets_kernel, eps=eps),
        out_shape=jax.ShapeDtypeStruct((bn, c2), jnp.float32),
        grid_spec=pltpu.PrefetchScalarGridSpec(
            num_scalar_prefetch=0,
            grid=(1,),
            in_specs=[
                full((bn, c0)),     # activations
                full((c0, c0)),     # W1 (bf16)
                full((c0, c1)),     # W2 (bf16)
                full((8, c0)),      # packed gamma/beta/w3 slab (f32)
            ],
            out_specs=full((bn, c2)),
        ),
        compiler_params=pltpu.CompilerParams(
            dimension_semantics=("arbitrary",)),
    )(x2d, w1, w2, slab)

    return out.reshape(b, n, c2)


def _reference(x, params, *, eps=1e-5):
    """Pure-JAX f32 reference mirroring the PyTorch forward (biases included —
    they cancel under BN, which also validates dropping them in the kernel)."""
    b, n, c0 = x.shape
    h = x.reshape(b * n, c0).astype(jnp.float32)
    for i in (1, 2, 3):
        w, bb = params[f"w{i}"], params[f"b{i}"]
        g, bt = params[f"g{i}"], params[f"bt{i}"]
        y = h @ w + bb
        mu = y.mean(axis=0, keepdims=True)
        var = jnp.mean(jnp.square(y - mu), axis=0, keepdims=True)
        y = (y - mu) * lax.rsqrt(var + eps) * g + bt
        h = jnp.maximum(y, 0.0)
    return h.reshape(b, n, -1)


if __name__ == "__main__":
    key = jax.random.PRNGKey(0)
    b, n = 2, 8
    c0, c1, c2 = 256, 128, 1            # module default channels=(256, 128, 1)

    keys = jax.random.split(key, 7)
    x = jax.random.normal(keys[0], (b, n, c0), dtype=jnp.float32)

    # Deterministic parameter init matching nn.Linear + xavier_normal_.
    def xavier(k, fan_in, fan_out):
        std = (2.0 / (fan_in + fan_out)) ** 0.5
        return std * jax.random.normal(k, (fan_in, fan_out), dtype=jnp.float32)

    def bias_init(k, fan_in, fan_out):
        bound = 1.0 / (fan_in ** 0.5)
        return jax.random.uniform(k, (fan_out,), jnp.float32, -bound, bound)

    params = {
        "w1": xavier(keys[1], c0, c0), "b1": bias_init(keys[2], c0, c0),
        "g1": jnp.ones((c0,), jnp.float32), "bt1": jnp.zeros((c0,), jnp.float32),
        "w2": xavier(keys[3], c0, c1), "b2": bias_init(keys[4], c0, c1),
        "g2": jnp.ones((c1,), jnp.float32), "bt2": jnp.zeros((c1,), jnp.float32),
        "w3": xavier(keys[5], c1, c2), "b3": bias_init(keys[6], c1, c2),
        "g3": jnp.ones((c2,), jnp.float32), "bt3": jnp.zeros((c2,), jnp.float32),
    }

    out = jax.block_until_ready(deep_sets_block_siamese(x, params))
    assert out.shape == (b, n, c2), out.shape

    ref = _reference(x, params)
    max_err = float(jnp.max(jnp.abs(out - ref)))
    # Tolerance covers the bf16 storage of W1/W2 and bf16 MXU operand passes
    # (outputs are BN-normalized, O(1)); real bugs produce O(1) errors.
    if max_err > 3e-2:
        raise AssertionError(f"kernel/reference mismatch, max abs err = {max_err}")

    print("KERNEL_OK")
</pallas_src>

<mosaic_0001>
module attributes {stable_mosaic.version = 11 : i64} {
  func.func @_deepsets_kernel(%arg0: i32, %arg1: memref<16x256xf32, #tpu.memory_space<vmem>>, %arg2: memref<256x256xbf16, #tpu.memory_space<vmem>>, %arg3: memref<256x128xbf16, #tpu.memory_space<vmem>>, %arg4: memref<8x256xf32, #tpu.memory_space<vmem>>, %arg5: memref<16x1xf32, #tpu.memory_space<vmem>>) attributes {dimension_semantics = [#tpu.dimension_semantics<arbitrary>], iteration_bounds = array<i64: 1>, scalar_prefetch = 0 : i64, scratch_operands = 0 : i64, tpu.core_type = #tpu.core_type<tc>, window_params = [{pipeline_mode = #tpu.pipeline_mode<synchronous>, transform_indices = @transform_0, window_bounds = array<i64: 16, 256>}, {pipeline_mode = #tpu.pipeline_mode<synchronous>, transform_indices = @transform_1, window_bounds = array<i64: 256, 256>}, {pipeline_mode = #tpu.pipeline_mode<synchronous>, transform_indices = @transform_2, window_bounds = array<i64: 256, 128>}, {pipeline_mode = #tpu.pipeline_mode<synchronous>, transform_indices = @transform_3, window_bounds = array<i64: 8, 256>}, {pipeline_mode = #tpu.pipeline_mode<synchronous>, transform_indices = @transform_4, window_bounds = array<i64: 16, 1>}]} {
    %c0 = arith.constant 0 : index
    %c0_0 = arith.constant 0 : index
    %0 = vector.load %arg1[%c0, %c0_0] : memref<16x256xf32, #tpu.memory_space<vmem>>, vector<16x256xf32>
    %1 = arith.truncf %0 : vector<16x256xf32> to vector<16x256xbf16>
    %c0_1 = arith.constant 0 : index
    %c0_2 = arith.constant 0 : index
    %2 = vector.load %arg2[%c0_1, %c0_2] : memref<256x256xbf16, #tpu.memory_space<vmem>>, vector<256x256xbf16>
    %cst = arith.constant dense<0.000000e+00> : vector<16x256xf32>
    %3 = tpu.matmul %1, %2, %cst {dimension_numbers = #tpu.dot_dimension_numbers<[1], [0], [0], [1], [0, 0, 1, 1], [], []>} : vector<16x256xbf16>, vector<256x256xbf16>, vector<16x256xf32> -> vector<16x256xf32>
    %c0_3 = arith.constant 0 : index
    %c0_4 = arith.constant 0 : index
    %4 = vector.load %arg4[%c0_3, %c0_4] : memref<8x256xf32, #tpu.memory_space<vmem>>, vector<1x256xf32>
    %c1 = arith.constant 1 : index
    %c0_5 = arith.constant 0 : index
    %5 = vector.load %arg4[%c1, %c0_5] : memref<8x256xf32, #tpu.memory_space<vmem>>, vector<1x256xf32>
    %cst_6 = arith.constant dense<0.000000e+00> : vector<256xf32>
    %6 = vector.multi_reduction <add>, %3, %cst_6 [0] : vector<16x256xf32> to vector<256xf32>
    %7 = vector.shape_cast %6 : vector<256xf32> to vector<1x256xf32>
    %cst_7 = arith.constant 1.600000e+01 : f32
    %8 = vector.broadcast %cst_7 : f32 to vector<1x256xf32>
    %9 = arith.divf %7, %8 : vector<1x256xf32>
    %10 = arith.mulf %3, %3 : vector<16x256xf32>
    %cst_8 = arith.constant dense<0.000000e+00> : vector<256xf32>
    %11 = vector.multi_reduction <add>, %10, %cst_8 [0] : vector<16x256xf32> to vector<256xf32>
    %12 = vector.shape_cast %11 : vector<256xf32> to vector<1x256xf32>
    %cst_9 = arith.constant 1.600000e+01 : f32
    %13 = vector.broadcast %cst_9 : f32 to vector<1x256xf32>
    %14 = arith.divf %12, %13 : vector<1x256xf32>
    %15 = arith.mulf %9, %9 : vector<1x256xf32>
    %16 = arith.subf %14, %15 : vector<1x256xf32>
    %cst_10 = arith.constant 9.99999974E-6 : f32
    %17 = vector.broadcast %cst_10 : f32 to vector<1x256xf32>
    %18 = arith.addf %16, %17 : vector<1x256xf32>
    %19 = math.rsqrt %18 : vector<1x256xf32>
    %20 = arith.mulf %4, %19 : vector<1x256xf32>
    %21 = arith.mulf %9, %20 : vector<1x256xf32>
    %22 = arith.subf %5, %21 : vector<1x256xf32>
    %23 = vector.broadcast %20 : vector<1x256xf32> to vector<16x256xf32>
    %24 = arith.mulf %3, %23 : vector<16x256xf32>
    %25 = vector.broadcast %22 : vector<1x256xf32> to vector<16x256xf32>
    %26 = arith.addf %24, %25 : vector<16x256xf32>
    %cst_11 = arith.constant 0.000000e+00 : f32
    %27 = vector.broadcast %cst_11 : f32 to vector<16x256xf32>
    %28 = arith.maximumf %26, %27 : vector<16x256xf32>
    %29 = arith.truncf %28 : vector<16x256xf32> to vector<16x256xbf16>
    %c0_12 = arith.constant 0 : index
    %c0_13 = arith.constant 0 : index
    %30 = vector.load %arg3[%c0_12, %c0_13] : memref<256x128xbf16, #tpu.memory_space<vmem>>, vector<256x128xbf16>
    %cst_14 = arith.constant dense<0.000000e+00> : vector<16x128xf32>
    %31 = tpu.matmul %29, %30, %cst_14 {dimension_numbers = #tpu.dot_dimension_numbers<[1], [0], [0], [1], [0, 0, 1, 1], [], []>} : vector<16x256xbf16>, vector<256x128xbf16>, vector<16x128xf32> -> vector<16x128xf32>
    %c2 = arith.constant 2 : index
    %c0_15 = arith.constant 0 : index
    %32 = vector.load %arg4[%c2, %c0_15] : memref<8x256xf32, #tpu.memory_space<vmem>>, vector<1x128xf32>
    %c3 = arith.constant 3 : index
    %c0_16 = arith.constant 0 : index
    %33 = vector.load %arg4[%c3, %c0_16] : memref<8x256xf32, #tpu.memory_space<vmem>>, vector<1x128xf32>
    %cst_17 = arith.constant dense<0.000000e+00> : vector<128xf32>
    %34 = vector.multi_reduction <add>, %31, %cst_17 [0] : vector<16x128xf32> to vector<128xf32>
    %35 = vector.shape_cast %34 : vector<128xf32> to vector<1x128xf32>
    %cst_18 = arith.constant 1.600000e+01 : f32
    %36 = vector.broadcast %cst_18 : f32 to vector<1x128xf32>
    %37 = arith.divf %35, %36 : vector<1x128xf32>
    %38 = arith.mulf %31, %31 : vector<16x128xf32>
    %cst_19 = arith.constant dense<0.000000e+00> : vector<128xf32>
    %39 = vector.multi_reduction <add>, %38, %cst_19 [0] : vector<16x128xf32> to vector<128xf32>
    %40 = vector.shape_cast %39 : vector<128xf32> to vector<1x128xf32>
    %cst_20 = arith.constant 1.600000e+01 : f32
    %41 = vector.broadcast %cst_20 : f32 to vector<1x128xf32>
    %42 = arith.divf %40, %41 : vector<1x128xf32>
    %43 = arith.mulf %37, %37 : vector<1x128xf32>
    %44 = arith.subf %42, %43 : vector<1x128xf32>
    %cst_21 = arith.constant 9.99999974E-6 : f32
    %45 = vector.broadcast %cst_21 : f32 to vector<1x128xf32>
    %46 = arith.addf %44, %45 : vector<1x128xf32>
    %47 = math.rsqrt %46 : vector<1x128xf32>
    %48 = arith.mulf %32, %47 : vector<1x128xf32>
    %49 = arith.mulf %37, %48 : vector<1x128xf32>
    %50 = arith.subf %33, %49 : vector<1x128xf32>
    %51 = vector.broadcast %48 : vector<1x128xf32> to vector<16x128xf32>
    %52 = arith.mulf %31, %51 : vector<16x128xf32>
    %53 = vector.broadcast %50 : vector<1x128xf32> to vector<16x128xf32>
    %54 = arith.addf %52, %53 : vector<16x128xf32>
    %cst_22 = arith.constant 0.000000e+00 : f32
    %55 = vector.broadcast %cst_22 : f32 to vector<16x128xf32>
    %56 = arith.maximumf %54, %55 : vector<16x128xf32>
    %c6 = arith.constant 6 : index
    %c0_23 = arith.constant 0 : index
    %57 = vector.load %arg4[%c6, %c0_23] : memref<8x256xf32, #tpu.memory_space<vmem>>, vector<1x128xf32>
    %58 = vector.broadcast %57 : vector<1x128xf32> to vector<16x128xf32>
    %59 = arith.mulf %56, %58 : vector<16x128xf32>
    %cst_24 = arith.constant dense<0.000000e+00> : vector<16xf32>
    %60 = vector.multi_reduction <add>, %59, %cst_24 [1] : vector<16x128xf32> to vector<16xf32>
    %61 = vector.shape_cast %60 : vector<16xf32> to vector<16x1xf32>
    %c4 = arith.constant 4 : index
    %c0_25 = arith.constant 0 : index
    %62 = vector.load %arg4[%c4, %c0_25] : memref<8x256xf32, #tpu.memory_space<vmem>>, vector<1x1xf32>
    %c5 = arith.constant 5 : index
    %c0_26 = arith.constant 0 : index
    %63 = vector.load %arg4[%c5, %c0_26] : memref<8x256xf32, #tpu.memory_space<vmem>>, vector<1x1xf32>
    %cst_27 = arith.constant dense<0.000000e+00> : vector<1xf32>
    %64 = vector.multi_reduction <add>, %61, %cst_27 [0] : vector<16x1xf32> to vector<1xf32>
    %65 = vector.shape_cast %64 : vector<1xf32> to vector<1x1xf32>
    %cst_28 = arith.constant 1.600000e+01 : f32
    %66 = vector.broadcast %cst_28 : f32 to vector<1x1xf32>
    %67 = arith.divf %65, %66 : vector<1x1xf32>
    %68 = arith.mulf %61, %61 : vector<16x1xf32>
    %cst_29 = arith.constant dense<0.000000e+00> : vector<1xf32>
    %69 = vector.multi_reduction <add>, %68, %cst_29 [0] : vector<16x1xf32> to vector<1xf32>
    %70 = vector.shape_cast %69 : vector<1xf32> to vector<1x1xf32>
    %cst_30 = arith.constant 1.600000e+01 : f32
    %71 = vector.broadcast %cst_30 : f32 to vector<1x1xf32>
    %72 = arith.divf %70, %71 : vector<1x1xf32>
    %73 = arith.mulf %67, %67 : vector<1x1xf32>
    %74 = arith.subf %72, %73 : vector<1x1xf32>
    %cst_31 = arith.constant 9.99999974E-6 : f32
    %75 = vector.broadcast %cst_31 : f32 to vector<1x1xf32>
    %76 = arith.addf %74, %75 : vector<1x1xf32>
    %77 = math.rsqrt %76 : vector<1x1xf32>
    %78 = arith.mulf %62, %77 : vector<1x1xf32>
    %79 = arith.mulf %67, %78 : vector<1x1xf32>
    %80 = arith.subf %63, %79 : vector<1x1xf32>
    %81 = vector.broadcast %78 : vector<1x1xf32> to vector<16x1xf32>
    %82 = arith.mulf %61, %81 : vector<16x1xf32>
    %83 = vector.broadcast %80 : vector<1x1xf32> to vector<16x1xf32>
    %84 = arith.addf %82, %83 : vector<16x1xf32>
    %cst_32 = arith.constant 0.000000e+00 : f32
    %85 = vector.broadcast %cst_32 : f32 to vector<16x1xf32>
    %86 = arith.maximumf %84, %85 : vector<16x1xf32>
    %c0_33 = arith.constant 0 : index
    %c0_34 = arith.constant 0 : index
    %87 = vector.load %arg5[%c0_33, %c0_34] : memref<16x1xf32, #tpu.memory_space<vmem>>, vector<16x1xf32>
    tpu.vector_store %arg5[%c0_33, %c0_34], %86 {strides = array<i32>} : memref<16x1xf32, #tpu.memory_space<vmem>>, vector<16x1xf32>,
    return
  }
  func.func @transform_0(%arg0: i32) -> (i32, i32) {
    %c0_i32 = arith.constant 0 : i32
    %c0_i32_0 = arith.constant 0 : i32
    %c0_i32_1 = arith.constant 0 : i32
    return %c0_i32, %c0_i32_0 : i32, i32
  }
  func.func @transform_1(%arg0: i32) -> (i32, i32) {
    %c0_i32 = arith.constant 0 : i32
    %c0_i32_0 = arith.constant 0 : i32
    %c0_i32_1 = arith.constant 0 : i32
    return %c0_i32, %c0_i32_0 : i32, i32
  }
  func.func @transform_2(%arg0: i32) -> (i32, i32) {
    %c0_i32 = arith.constant 0 : i32
    %c0_i32_0 = arith.constant 0 : i32
    %c0_i32_1 = arith.constant 0 : i32
    return %c0_i32, %c0_i32_0 : i32, i32
  }
  func.func @transform_3(%arg0: i32) -> (i32, i32) {
    %c0_i32 = arith.constant 0 : i32
    %c0_i32_0 = arith.constant 0 : i32
    %c0_i32_1 = arith.constant 0 : i32
    return %c0_i32, %c0_i32_0 : i32, i32
  }
  func.func @transform_4(%arg0: i32) -> (i32, i32) {
    %c0_i32 = arith.constant 0 : i32
    %c0_i32_0 = arith.constant 0 : i32
    %c0_i32_1 = arith.constant 0 : i32
    return %c0_i32, %c0_i32_0 : i32, i32
  }
}

</mosaic_0001>

<bundles_post_ra>
// kernel: tpu_custom_call.1
= control target key start
LH: loop header
LB: loop body
LE: loop exit
PB: predicated region body
PF: predicated region fallthrough
CT: control target
= control target key end

     0   :  { %9 = vsyncpa [#allocation3], 0  ;;  %s1156_s0 = inlined_call_operand.hbm [shape: f32[16,256], index: 0, kind: input, shape index: {}]   ;;  %s1157_s1 = inlined_call_operand.hbm [shape: bf16[256,256], index: 1, kind: input, shape index: {}]   ;;  %s1158_s2 = inlined_call_operand.hbm [shape: bf16[256,128], index: 2, kind: input, shape index: {}]   ;;  %s1159_s3 = inlined_call_operand.hbm [shape: f32[8,256], index: 3, kind: input, shape index: {}]   ;;  %s1160_s4 = inlined_call_operand.vmem [shape: f32[16,1], index: 4, kind: output, shape index: {}]  }
   0x1   :  { %10 = vsyncpa [#allocation5], 0  ;;  %s29_s17 = sshll.u32 %s1157_s1, 4  ;;  %s30_s17 = int_to_ptr.hbm [resolvable:$true] %s29_s17 }
   0x2   :  { %11 = vsyncpa [#allocation8], 0  ;;  %s1063_s18 = smov [#allocation4]   ;;  %s16_s22 = sshll.u32 %s1156_s0, 4  ;;  %s17_s22 = int_to_ptr.hbm [resolvable:$true] %s16_s22 }
   0x3   :  { %s31_s19 = sshll.u32 %s1063_s18, 4  ;;  %s1064_s23 = smov 128   ;;  %s32_s19 = int_to_ptr.vmem [resolvable:$true] %s31_s19 }
   0x4   :  { %s1065_s24 = smov 8   ;;  %s1066_s25 = smov [#allocation2]  }
   0x5   :  { %37 = dma.hbm_to_vmem [thread:$0]  %s30_s17, 4096, %s32_s19, [#allocation5], %s1064_s23, %s1064_s23, %s1065_s24  }
   0x6   :  { %s18_s26 = sshll.u32 %s1066_s25, 4  ;;  %s1067_s27 = smov 256   ;;  %s19_s26 = int_to_ptr.vmem [resolvable:$true] %s18_s26 }
   0x7   :  { %s1068_s28 = smov 16   ;;  %s42_s30 = sshll.u32 %s1158_s2, 4  ;;  %s43_s30 = int_to_ptr.hbm [resolvable:$true] %s42_s30 }
   0x8   :  { %24 = dma.hbm_to_vmem [thread:$0]  %s17_s22, 512, %s19_s26, [#allocation3], %s1067_s27, %s1067_s27, %s1068_s28  }
   0x9   :  { %s1069_s5 = smov [#allocation6]   ;;  %s56_s8 = sshll.u32 %s1159_s3, 4  ;;  %s57_s8 = int_to_ptr.hbm [resolvable:$true] %s56_s8 }
   0xa   :  { %s44_s6 = sshll.u32 %s1069_s5, 4  ;;  %s1070_s9 = smov 64   ;;  %s45_s6 = int_to_ptr.vmem [resolvable:$true] %s44_s6 }
   0xb   :  { %s1071_s10 = smov 4   ;;  %s1072_s11 = smov [#allocation7]  }
   0xc   :  { %50 = dma.hbm_to_vmem [thread:$0]  %s43_s30, 2048, %s45_s6, [#allocation5], %s1070_s9, %s1070_s9, %s1071_s10  }
   0xd   :  { %s58_s12 = sshll.u32 %s1072_s11, 4  ;;  %s59_s12 = int_to_ptr.vmem [resolvable:$true] %s58_s12 }
   0xe   :  { %61 = dma.hbm_to_vmem [thread:$0]  %s57_s8, 256, %s59_s12, [#allocation8]  }
   0xf   :  { %1057 = dma.done.wait [#allocation3], 512  }
  0x10   :  { %1058 = vsyncadd [#allocation3], 4294966784 }
  0x11   :  { %1059 = dma.done.wait [#allocation5], 6144  }
  0x12   :  { %1060 = vsyncadd [#allocation5], 4294961152 }
  0x13   :  { %1061 = dma.done.wait [#allocation8], 256  }
  0x14   :  { %1062 = vsyncadd [#allocation8], 4294967040  ;;  %v758_v0 = vld [vmem:[#allocation4 + $0x70] sm:$0xf]  ;;  %v907_v1 = vld [vmem:[#allocation4 + $0x74] sm:$0xf0] }
  0x15   :  { %v822_v2 = vld [vmem:[#allocation4 + $0xf0] sm:$0xf]  ;;  %v759_v3 = vor.u32 %v907_v1, %v758_v0  ;;  %v923_v4 = vld [vmem:[#allocation4 + $0xf4] sm:$0xf0]  ;;  %v906_v5 = vld [vmem:[#allocation4 + $0x74] sm:$0xf] }
  0x16   :  { %v760_v6 = vld [vmem:[#allocation4 + $0x78] sm:$0xf0]  ;;  %v823_v7 = vor.u32 %v923_v4, %v822_v2  ;;  %v922_v9 = vld [vmem:[#allocation4 + $0xf4] sm:$0xf]  ;;  %v750_v11 = vld [vmem:[#allocation4 + $0x60] sm:$0xf] }
  0x17   :  { %v763_v8 = vor.u32 %v906_v5, %v760_v6  ;;  %v824_v10 = vld [vmem:[#allocation4 + $0xf8] sm:$0xf0]  ;;  %276 = vmatpush.bf16.msra.mxu0 %v759_v3  ;;  %v905_v13 = vld [vmem:[#allocation4 + $0x64] sm:$0xf0]  ;;  %v814_v14 = vld [vmem:[#allocation4 + $0xe0] sm:$0xf] }
  0x18   :  { %v827_v12 = vor.u32 %v922_v9, %v824_v10  ;;  %v921_v15 = vld [vmem:[#allocation4 + $0xe4] sm:$0xf0]  ;;  %290 = vmatpush.bf16.msra.mxu1 %v823_v7  ;;  %v751_v16 = vor.u32 %v905_v13, %v750_v11  ;;  %v904_v18 = vld [vmem:[#allocation4 + $0x64] sm:$0xf]  ;;  %v752_v19 = vld [vmem:[#allocation4 + $0x68] sm:$0xf0] }
  0x19   :  { %304 = vmatpush.bf16.msra.mxu2 %v763_v8  ;;  %v815_v17 = vor.u32 %v921_v15, %v814_v14  ;;  %v920_v20 = vld [vmem:[#allocation4 + $0xe4] sm:$0xf]  ;;  %v755_v21 = vor.u32 %v904_v18, %v752_v19  ;;  %v816_v22 = vld [vmem:[#allocation4 + $0xe8] sm:$0xf0]  ;;  %v742_v23 = vld [vmem:[#allocation4 + $0x50] sm:$0xf] }
  0x1a   :  { %318 = vmatpush.bf16.msra.mxu3 %v827_v12  ;;  %v903_v24 = vld [vmem:[#allocation4 + $0x54] sm:$0xf0]  ;;  %v819_v25 = vor.u32 %v920_v20, %v816_v22  ;;  %v806_v26 = vld [vmem:[#allocation4 + $0xd0] sm:$0xf]  ;;  %v902_v28 = vld [vmem:[#allocation4 + $0x54] sm:$0xf] }
  0x1b   :  { %v919_v27 = vld [vmem:[#allocation4 + $0xd4] sm:$0xf0]  ;;  %277 = vmatpush.bf16.msra.mxu0 %v751_v16  ;;  %v743_v29 = vor.u32 %v903_v24, %v742_v23  ;;  %v744_v30 = vld [vmem:[#allocation4 + $0x58] sm:$0xf0]  ;;  %v918_v31 = vld [vmem:[#allocation4 + $0xd4] sm:$0xf] }
  0x1c   :  { %v808_v32 = vld [vmem:[#allocation4 + $0xd8] sm:$0xf0]  ;;  %291 = vmatpush.bf16.msra.mxu1 %v815_v17  ;;  %v807_v33 = vor.u32 %v919_v27, %v806_v26  ;;  %v747_v34 = vor.u32 %v902_v28, %v744_v30  ;;  %v734_v35 = vld [vmem:[#allocation4 + $0x40] sm:$0xf]  ;;  %v901_v36 = vld [vmem:[#allocation4 + $0x44] sm:$0xf0] }
  0x1d   :  { %305 = vmatpush.bf16.msra.mxu2 %v755_v21  ;;  %v798_v37 = vld [vmem:[#allocation4 + $0xc0] sm:$0xf]  ;;  %v811_v38 = vor.u32 %v918_v31, %v808_v32  ;;  %v917_v39 = vld [vmem:[#allocation4 + $0xc4] sm:$0xf0]  ;;  %v900_v40 = vld [vmem:[#allocation4 + $0x44] sm:$0xf]  ;;  %v735_v44 = vor.u32 %v901_v36, %v734_v35 }
  0x1e   :  { %319 = vmatpush.bf16.msra.mxu3 %v819_v25  ;;  %v736_v41 = vld [vmem:[#allocation4 + $0x48] sm:$0xf0]  ;;  %v916_v42 = vld [vmem:[#allocation4 + $0xc4] sm:$0xf]  ;;  %v799_v45 = vor.u32 %v917_v39, %v798_v37  ;;  %v726_v47 = vld [vmem:[#allocation4 + $0x30] sm:$0xf] }
  0x1f   :  { %v800_v43 = vld [vmem:[#allocation4 + $0xc8] sm:$0xf0]  ;;  %278 = vmatpush.bf16.msra.mxu0 %v743_v29  ;;  %v739_v46 = vor.u32 %v900_v40, %v736_v41  ;;  %v899_v48 = vld [vmem:[#allocation4 + $0x34] sm:$0xf0]  ;;  %v790_v49 = vld [vmem:[#allocation4 + $0xb0] sm:$0xf] }
  0x20   :  { %292 = vmatpush.bf16.msra.mxu1 %v807_v33  ;;  %v803_v50 = vor.u32 %v916_v42, %v800_v43  ;;  %v915_v51 = vld [vmem:[#allocation4 + $0xb4] sm:$0xf0]  ;;  %v898_v52 = vld [vmem:[#allocation4 + $0x34] sm:$0xf]  ;;  %v728_v53 = vld [vmem:[#allocation4 + $0x38] sm:$0xf0]  ;;  %v727_v56 = vor.u32 %v899_v48, %v726_v47 }
  0x21   :  { %306 = vmatpush.bf16.msra.mxu2 %v747_v34  ;;  %v914_v54 = vld [vmem:[#allocation4 + $0xb4] sm:$0xf]  ;;  %v792_v55 = vld [vmem:[#allocation4 + $0xb8] sm:$0xf0]  ;;  %v791_v57 = vor.u32 %v915_v51, %v790_v49  ;;  %v731_v58 = vor.u32 %v898_v52, %v728_v53  ;;  %v718_v59 = vld [vmem:[#allocation4 + $0x20] sm:$0xf] }
  0x22   :  { %320 = vmatpush.bf16.msra.mxu3 %v811_v38  ;;  %v897_v60 = vld [vmem:[#allocation4 + $0x24] sm:$0xf0]  ;;  %v782_v61 = vld [vmem:[#allocation4 + $0xa0] sm:$0xf]  ;;  %v795_v62 = vor.u32 %v914_v54, %v792_v55  ;;  %v896_v0 = vld [vmem:[#allocation4 + $0x24] sm:$0xf] }
  0x23   :  { %279 = vmatpush.bf16.msra.mxu0 %v735_v44  ;;  %v913_v63 = vld [vmem:[#allocation4 + $0xa4] sm:$0xf0]  ;;  %v720_v1 = vld [vmem:[#allocation4 + $0x28] sm:$0xf0]  ;;  %v912_v2 = vld [vmem:[#allocation4 + $0xa4] sm:$0xf]  ;;  %v719_v4 = vor.u32 %v897_v60, %v718_v59 }
  0x24   :  { %293 = vmatpush.bf16.msra.mxu1 %v799_v45  ;;  %v784_v3 = vld [vmem:[#allocation4 + $0xa8] sm:$0xf0]  ;;  %v783_v5 = vor.u32 %v913_v63, %v782_v61  ;;  %v723_v6 = vor.u32 %v896_v0, %v720_v1  ;;  %v710_v7 = vld [vmem:[#allocation4 + $0x10] sm:$0xf]  ;;  %v895_v8 = vld [vmem:[#allocation4 + $0x14] sm:$0xf0] }
  0x25   :  { %307 = vmatpush.bf16.msra.mxu2 %v739_v46  ;;  %v774_v9 = vld [vmem:[#allocation4 + $0x90] sm:$0xf]  ;;  %v787_v10 = vor.u32 %v912_v2, %v784_v3  ;;  %v911_v11 = vld [vmem:[#allocation4 + $0x94] sm:$0xf0]  ;;  %v894_v12 = vld [vmem:[#allocation4 + $0x14] sm:$0xf]  ;;  %v711_v16 = vor.u32 %v895_v8, %v710_v7 }
  0x26   :  { %321 = vmatpush.bf16.msra.mxu3 %v803_v50  ;;  %v712_v13 = vld [vmem:[#allocation4 + $0x18] sm:$0xf0]  ;;  %v910_v14 = vld [vmem:[#allocation4 + $0x94] sm:$0xf]  ;;  %v775_v17 = vor.u32 %v911_v11, %v774_v9  ;;  %v702_v19 = vld [vmem:[#allocation4] sm:$0xf] }
  0x27   :  { %280 = vmatpush.bf16.msra.mxu0 %v727_v56  ;;  %v776_v15 = vld [vmem:[#allocation4 + $0x98] sm:$0xf0]  ;;  %v715_v18 = vor.u32 %v894_v12, %v712_v13  ;;  %v893_v20 = vld [vmem:[#allocation4 + $0x4] sm:$0xf0]  ;;  %v766_v21 = vld [vmem:[#allocation4 + $0x80] sm:$0xf] }
  0x28   :  { %294 = vmatpush.bf16.msra.mxu1 %v791_v57  ;;  %v779_v22 = vor.u32 %v910_v14, %v776_v15  ;;  %v909_v23 = vld [vmem:[#allocation4 + $0x84] sm:$0xf0]  ;;  %v892_v24 = vld [vmem:[#allocation4 + $0x4] sm:$0xf]  ;;  %v704_v25 = vld [vmem:[#allocation4 + $0x8] sm:$0xf0]  ;;  %v703_v28 = vor.u32 %v893_v20, %v702_v19 }
  0x29   :  { %308 = vmatpush.bf16.msra.mxu2 %v731_v58  ;;  %v908_v26 = vld [vmem:[#allocation4 + $0x84] sm:$0xf]  ;;  %v768_v27 = vld [vmem:[#allocation4 + $0x88] sm:$0xf0]  ;;  %v80_v30 = vld [vmem:[#allocation2 + $0x10] sm:$0xff]  ;;  %v767_v31 = vor.u32 %v909_v23, %v766_v21  ;;  %v707_v32 = vor.u32 %v892_v24, %v704_v25  ;;  %v1073_v38 = vmov 16.0  }
  0x2a   :  { %322 = vmatpush.bf16.msra.mxu3 %v795_v62  ;;  %v78_v29 = vld [vmem:[#allocation2] sm:$0xff]  ;;  %v79_v33 = vld [vmem:[#allocation2 + $0x8] sm:$0xff]  ;;  %v81_v34 = vld [vmem:[#allocation2 + $0x18] sm:$0xff]  ;;  %v771_v35 = vor.u32 %v908_v26, %v768_v27  ;;  %951 = vrcp.f32 %v1073_v38  ;;  %vm407_vm6 = vcmask 1040384   ;;  %vm690_vm14 = vcmask 7168  }
  0x2b   :  { %281 = vmatpush.bf16.msra.mxu0 %v719_v4  ;;  %v82_v36 = vpack.c.bf16 %v80_v30, %v78_v29  ;;  %v83_v37 = vpack.c.bf16 %v81_v34, %v79_v33  ;;  %v931_v61 = vld [vmem:[#allocation6 + $0x38] sm:$0xff]  ;;  %v930_v8 = vld [vmem:[#allocation6 + $0x30] sm:$0xff]  ;;  %v929_v19 = vld [vmem:[#allocation6 + $0x28] sm:$0xff] }
  0x2c   :  { %295 = vmatpush.bf16.msra.mxu1 %v783_v5  ;;  %v939_v62 = vld [vmem:[#allocation6 + $0x78] sm:$0xff]  ;;  %v938_v9 = vld [vmem:[#allocation6 + $0x70] sm:$0xff]  ;;  %v937_v20 = vld [vmem:[#allocation6 + $0x68] sm:$0xff] }
  0x2d   :  { %309 = vmatpush.bf16.msra.mxu2 %v723_v6  ;;  %v928_v29 = vld [vmem:[#allocation6 + $0x20] sm:$0xff]  ;;  %v935_v38 = vld [vmem:[#allocation6 + $0x58] sm:$0xff] }
  0x2e   :  { %323 = vmatpush.bf16.msra.mxu3 %v787_v10  ;;  %v936_v30 = vld [vmem:[#allocation6 + $0x60] sm:$0xff] }
  0x2f   :  { %282 = vmatpush.bf16.msra.mxu0 %v711_v16 }
  0x30   :  { %296 = vmatpush.bf16.msra.mxu1 %v775_v17  ;;  %v952_v41 = vpop.eup %951 }
  0x31   :  { %310 = vmatpush.bf16.msra.mxu2 %v715_v18  ;;  %v350_v44 = vmul.f32 16.0, %v952_v41  ;;  %vm354_vm0 = vweird.f32 %v952_v41 }
  0x32   :  { %324 = vmatpush.bf16.msra.mxu3 %v779_v22 }
  0x33   :  { %283 = vmatpush.bf16.msra.mxu0 %v703_v28  ;;  %v351_v50 = vsub.f32 1.0, %v350_v44  ;;  %v926_v44 = vld [vmem:[#allocation6 + $0x10] sm:$0xff] }
  0x34   :  { %297 = vmatpush.bf16.msra.mxu1 %v767_v31 }
  0x35   :  { %311 = vmatpush.bf16.msra.mxu2 %v707_v32  ;;  %v352_v56 = vmul.f32 %v952_v41, %v351_v50 }
  0x36   :  { %325 = vmatpush.bf16.msra.mxu3 %v771_v35  ;;  %284 = vmatmul.bf16.vlgmr.msra.gmra.mxu0 %v82_v36 }
  0x37   :  { %298 = vmatmul.bf16.vlgmr.msra.gmra.mxu1 %v83_v37  ;;  %571 = vmatpush.bf16.msrb.mxu0 %v931_v61  ;;  %v353_v3 = vadd.f32 %v952_v41, %v352_v56 }
  0x38   :  { %312 = vmatmul.bf16.vlgmr.msra.gmra.mxu2 %v82_v36  ;;  %585 = vmatpush.bf16.msrb.mxu1 %v939_v62 }
  0x39   :  { %326 = vmatmul.bf16.vlgmr.msra.gmra.mxu3 %v83_v37  ;;  %v1131_v14 = vsel %vm354_vm0, %v952_v41, %v353_v3  ;;  %v927_v37 = vld [vmem:[#allocation6 + $0x18] sm:$0xff] }
  0x3b   :  { %572 = vmatpush.bf16.msrb.mxu0 %v930_v8 }
  0x3c   :  { %586 = vmatpush.bf16.msrb.mxu1 %v938_v9 }
  0x3f   :  { %573 = vmatpush.bf16.msrb.mxu0 %v929_v19 }
  0x40   :  { %587 = vmatpush.bf16.msrb.mxu1 %v937_v20 }
  0x43   :  { %574 = vmatpush.bf16.msrb.mxu0 %v928_v29 }
  0x44   :  { %588 = vmatpush.bf16.msrb.mxu1 %v936_v30 }
  0x47   :  { %575 = vmatpush.bf16.msrb.mxu0 %v927_v37 }
  0x48   :  { %589 = vmatpush.bf16.msrb.mxu1 %v935_v38 }
  0x4b   :  { %576 = vmatpush.bf16.msrb.mxu0 %v926_v44 }
  0xb3   :  { %v285_v39 = vpop.f32.mrf.mxu0 }
  0xb4   :  { %v299_v40 = vpop.f32.mrf.mxu1 }
  0xb5   :  { %v1111_v42 = vadd.f32 %v299_v40, %v285_v39 }
  0xb7   :  { %v358_v48 = vmul.f32 %v1111_v42, %v1111_v42 }
  0xbb   :  { %v313_v43 = vpop.f32.mrf.mxu2  ;;  %v287_v46 = vpop.f32.mrf.mxu0 }
  0xbc   :  { %v327_v45 = vpop.f32.mrf.mxu3  ;;  %v301_v47 = vpop.f32.mrf.mxu1 }
  0xbd   :  { %v1115_v49 = vadd.f32 %v301_v47, %v287_v46  ;;  %v1121_v55 = vadd.f32 %v327_v45, %v313_v43  ;;  %v934_v45 = vld [vmem:[#allocation6 + $0x50] sm:$0xff]  ;;  %v925_v47 = vld [vmem:[#allocation6 + $0x8] sm:$0xff] }
  0xbe   :  { %590 = vmatpush.bf16.msrb.mxu1 %v934_v45  ;;  %577 = vmatpush.bf16.msrb.mxu0 %v925_v47 }
  0xbf   :  { %v335_v51 = vadd.f32 %v1115_v49, %v1111_v42  ;;  %v360_v52 = vmul.f32 %v1115_v49, %v1115_v49  ;;  %v359_v2 = vmul.f32 %v1121_v55, %v1121_v55 }
  0xc1   :  { %v336_v53 = vrot.slane %v335_v51, 4  ;;  %v362_v54 = vadd.f32 %v360_v52, %v358_v48  ;;  %v933_v48 = vld [vmem:[#allocation6 + $0x48] sm:$0xff] }
  0xc2   :  { %591 = vmatpush.bf16.msrb.mxu1 %v933_v48 }
  0xc3   :  { %v315_v57 = vpop.f32.mrf.mxu2  ;;  %v337_v58 = vadd.f32 %v336_v53, %v335_v51  ;;  %v363_v59 = vrot.slane %v362_v54, 4  ;;  %v924_v53 = vld [vmem:[#allocation6] sm:$0xff] }
  0xc4   :  { %v329_v60 = vpop.f32.mrf.mxu3  ;;  %578 = vmatpush.bf16.msrb.mxu0 %v924_v53 }
  0xc5   :  { %v1123_v63 = vadd.f32 %v329_v60, %v315_v57  ;;  %v338_v0 = vrot.slane %v337_v58, 2  ;;  %v364_v1 = vadd.f32 %v363_v59, %v362_v54  ;;  %v932_v54 = vld [vmem:[#allocation6 + $0x40] sm:$0xff] }
  0xc6   :  { %592 = vmatpush.bf16.msrb.mxu1 %v932_v54 }
  0xc7   :  { %v342_v4 = vadd.f32 %v1123_v63, %v1121_v55  ;;  %v361_v5 = vmul.f32 %v1123_v63, %v1123_v63  ;;  %v339_v6 = vadd.f32 %v338_v0, %v337_v58  ;;  %v365_v7 = vrot.slane %v364_v1, 2 }
  0xc9   :  { %v343_v10 = vrot.slane %v342_v4, 4  ;;  %v369_v11 = vadd.f32 %v361_v5, %v359_v2  ;;  %v340_v12 = vrot.slane %v339_v6, 1  ;;  %v366_v13 = vadd.f32 %v365_v7, %v364_v1 }
  0xcb   :  { %v344_v15 = vadd.f32 %v343_v10, %v342_v4  ;;  %v370_v16 = vrot.slane %v369_v11, 4  ;;  %v341_v17 = vadd.f32 %v340_v12, %v339_v6  ;;  %v367_v18 = vrot.slane %v366_v13, 1  ;;  %v332_v4 = vld [vmem:[#allocation7] ss:$8 sm:$0x3] }
  0xcd   :  { %v345_v21 = vrot.slane %v344_v15, 2  ;;  %v371_v22 = vadd.f32 %v370_v16, %v369_v11  ;;  %v1134_v23 = vmul.f32 %v1131_v14, %v341_v17  ;;  %v368_v24 = vadd.f32 %v367_v18, %v366_v13  ;;  %v334_v13 = vld [vmem:[#allocation7 + $0x1] ss:$8 sm:$0x3] }
  0xcf   :  { %v346_v25 = vadd.f32 %v345_v21, %v344_v15  ;;  %v372_v26 = vrot.slane %v371_v22, 2  ;;  %v376_v27 = vmul.f32 %v368_v24, %v1131_v14  ;;  %v378_v28 = vmul.f32 %v1134_v23, %v1134_v23 }
  0xd1   :  { %v347_v31 = vrot.slane %v346_v25, 1  ;;  %v373_v32 = vadd.f32 %v372_v26, %v371_v22  ;;  %v380_v33 = vsub.f32 %v376_v27, %v378_v28 }
  0xd3   :  { %v348_v34 = vadd.f32 %v347_v31, %v346_v25  ;;  %v374_v35 = vrot.slane %v373_v32, 1  ;;  %v382_v36 = vadd.f32 1e-05, %v380_v33 }
  0xd5   :  { %v357_v39 = vmul.f32 %v1131_v14, %v348_v34  ;;  %v375_v40 = vadd.f32 %v374_v35, %v373_v32  ;;  %953 = vrsqrt.f32 %v382_v36  ;;  %vm390_vm5 = vweird.f32 %v382_v36 }
  0xd7   :  { %v377_v41 = vmul.f32 %v375_v40, %v1131_v14  ;;  %v379_v43 = vmul.f32 %v357_v39, %v357_v39 }
  0xd9   :  { %v381_v46 = vsub.f32 %v377_v41, %v379_v43 }
  0xdb   :  { %v383_v50 = vadd.f32 1e-05, %v381_v46  ;;  %v954_v51 = vpop.eup %953 }
  0xdc   :  { %v385_v52 = vmul.f32 %v954_v51, %v382_v36  ;;  %vm391_vm2 = vweird.f32 %v954_v51 }
  0xdd   :  { %955 = vrsqrt.f32 %v383_v50  ;;  %vm400_vm3 = vweird.f32 %v383_v50  ;;  %vm392_vm7 = vmor %vm390_vm5, %vm391_vm2 }
  0xde   :  { %v386_v56 = vmul.f32 %v954_v51, %v385_v52 }
  0xe0   :  { %v387_v58 = vmul.f32 0.5, %v386_v56 }
  0xe2   :  { %v388_v61 = vsub.f32 1.5, %v387_v58 }
  0xe3   :  { %v956_v57 = vpop.eup %955 }
  0xe4   :  { %v395_v59 = vmul.f32 %v956_v57, %v383_v50  ;;  %vm401_vm1 = vweird.f32 %v956_v57  ;;  %v389_v1 = vmul.f32 %v954_v51, %v388_v61 }
  0xe5   :  { %vm402_vm4 = vmor %vm400_vm3, %vm401_vm1 }
  0xe6   :  { %v396_v60 = vmul.f32 %v956_v57, %v395_v59  ;;  %v393_v6 = vsel %vm392_vm7, %v954_v51, %v389_v1 }
  0xe8   :  { %v397_v62 = vmul.f32 0.5, %v396_v60 }
  0xea   :  { %v398_v0 = vsub.f32 1.5, %v397_v62 }
  0xec   :  { %v399_v2 = vmul.f32 %v956_v57, %v398_v0 }
  0xee   :  { %v403_v3 = vsel %vm402_vm4, %v956_v57, %v399_v2  ;;  %v599_v2 = vld [vmem:[#allocation7 + $0x2] ss:$0 sm:$0xff] }
  0xef   :  { %v406_v5 = vrot.slane %v403_v3, 7 }
  0xf1   :  { %v408_v7 = vsel %vm407_vm6, %v393_v6, %v406_v5  ;;  %v600_v6 = vld [vmem:[#allocation7 + $0x3] ss:$0 sm:$0xff] }
  0xf2   :  { %v410_v8 = vmul.f32 %v408_v7, %v332_v4 }
  0xf4   :  { %v413_v9 = vperm.slane %v410_v8, 1  ;;  %v412_v10 = vperm.slane %v410_v8, 0 }
  0xf6   :  { %v417_v11 = vmul.f32 %v413_v9, %v357_v39  ;;  %v416_v15 = vmul.f32 %v412_v10, %v1134_v23  ;;  %v427_v18 = vmul.f32 %v413_v9, %v1123_v63  ;;  %v424_v19 = vmul.f32 %v412_v10, %v1111_v42 }
  0xf7   :  { %v426_v20 = vmul.f32 %v412_v10, %v1115_v49  ;;  %v425_v22 = vmul.f32 %v413_v9, %v1121_v55 }
  0xf8   :  { %v420_v12 = vrot.slane %v417_v11, 7  ;;  %v641_v11 = vld [vmem:[#allocation7 + $0x6] ss:$0 sm:$0xff] }
  0xfa   :  { %v421_v16 = vsel %vm407_vm6, %v416_v15, %v420_v12 }
  0xfb   :  { %v423_v17 = vsub.f32 %v334_v13, %v421_v16 }
  0xfd   :  { %v429_v21 = vperm.slane %v423_v17, 0  ;;  %v430_v24 = vperm.slane %v423_v17, 1 }
  0xff   :  { %v433_v25 = vadd.f32 %v429_v21, %v424_v19  ;;  %v435_v26 = vadd.f32 %v429_v21, %v426_v20  ;;  %v434_v27 = vadd.f32 %v430_v24, %v425_v22  ;;  %v436_v28 = vadd.f32 %v430_v24, %v427_v18 }
 0x101   :  { %v437_v29 = vmax.f32 %v433_v25, 0.0  ;;  %v439_v30 = vmax.f32 %v435_v26, 0.0  ;;  %v438_v31 = vmax.f32 %v434_v27, 0.0  ;;  %v440_v23 = vmax.f32 %v436_v28, 0.0 }
 0x103   :  { %v441_v32 = vpack.c.bf16 %v439_v30, %v437_v29  ;;  %v442_v33 = vpack.c.bf16 %v440_v23, %v438_v31 }
 0x105   :  { %579 = vmatmul.bf16.vlgmr.msrb.gmra.mxu0 %v441_v32  ;;  %593 = vmatmul.bf16.vlgmr.msrb.gmra.mxu1 %v442_v33 }
 0x182   :  { %v580_v63 = vpop.f32.mrf.mxu0  ;;  %v594_v42 = vpop.f32.mrf.mxu1 }
 0x183   :  { %v595_v34 = vadd.f32 %v594_v42, %v580_v63 }
 0x185   :  { %v609_v55 = vmul.f32 %v595_v34, %v595_v34 }
 0x18a   :  { %v582_v49 = vpop.f32.mrf.mxu0  ;;  %v596_v35 = vpop.f32.mrf.mxu1 }
 0x18b   :  { %v597_v36 = vadd.f32 %v596_v35, %v582_v49 }
 0x18d   :  { %v601_v37 = vadd.f32 %v597_v36, %v595_v34  ;;  %v610_v38 = vmul.f32 %v597_v36, %v597_v36 }
 0x18f   :  { %v602_v39 = vrot.slane %v601_v37, 4  ;;  %v611_v40 = vadd.f32 %v610_v38, %v609_v55 }
 0x191   :  { %v603_v41 = vadd.f32 %v602_v39, %v601_v37  ;;  %v612_v43 = vrot.slane %v611_v40, 4 }
 0x193   :  { %v604_v44 = vrot.slane %v603_v41, 2  ;;  %v613_v45 = vadd.f32 %v612_v43, %v611_v40 }
 0x195   :  { %v605_v46 = vadd.f32 %v604_v44, %v603_v41  ;;  %v614_v47 = vrot.slane %v613_v45, 2  ;;  %v648_v44 = vld [vmem:[#allocation7 + $0x4] ss:$0 sm:$0xff] }
 0x197   :  { %v606_v48 = vrot.slane %v605_v46, 1  ;;  %v615_v50 = vadd.f32 %v614_v47, %v613_v45 }
 0x199   :  { %v607_v51 = vadd.f32 %v606_v48, %v605_v46  ;;  %v616_v52 = vrot.slane %v615_v50, 1  ;;  %v649_v48 = vld [vmem:[#allocation7 + $0x5] ss:$0 sm:$0xff] }
 0x19b   :  { %v608_v53 = vmul.f32 %v607_v51, %v1131_v14  ;;  %v617_v54 = vadd.f32 %v616_v52, %v615_v50 }
 0x19d   :  { %v618_v56 = vmul.f32 %v617_v54, %v1131_v14  ;;  %v619_v57 = vmul.f32 %v608_v53, %v608_v53 }
 0x19f   :  { %v620_v58 = vsub.f32 %v618_v56, %v619_v57 }
 0x1a1   :  { %v621_v59 = vadd.f32 1e-05, %v620_v58 }
 0x1a3   :  { %957 = vrsqrt.f32 %v621_v59  ;;  %vm628_vm9 = vweird.f32 %v621_v59 }
 0x1a9   :  { %v958_v60 = vpop.eup %957 }
 0x1aa   :  { %v623_v61 = vmul.f32 %v958_v60, %v621_v59  ;;  %vm629_vm8 = vweird.f32 %v958_v60 }
 0x1ab   :  { %vm630_vm10 = vmor %vm628_vm9, %vm629_vm8 }
 0x1ac   :  { %v624_v62 = vmul.f32 %v958_v60, %v623_v61 }
 0x1ae   :  { %v625_v0 = vmul.f32 0.5, %v624_v62 }
 0x1b0   :  { %v626_v1 = vsub.f32 1.5, %v625_v0 }
 0x1b2   :  { %v627_v3 = vmul.f32 %v958_v60, %v626_v1 }
 0x1b4   :  { %v631_v4 = vsel %vm630_vm10, %v958_v60, %v627_v3 }
 0x1b5   :  { %v632_v5 = vmul.f32 %v631_v4, %v599_v2 }
 0x1b7   :  { %v633_v7 = vmul.f32 %v632_v5, %v608_v53  ;;  %v635_v9 = vmul.f32 %v632_v5, %v595_v34  ;;  %v636_v12 = vmul.f32 %v632_v5, %v597_v36 }
 0x1b9   :  { %v634_v8 = vsub.f32 %v600_v6, %v633_v7 }
 0x1bb   :  { %v637_v10 = vadd.f32 %v635_v9, %v634_v8  ;;  %v638_v16 = vadd.f32 %v636_v12, %v634_v8 }
 0x1bd   :  { %v639_v13 = vmax.f32 %v637_v10, 0.0  ;;  %v640_v17 = vmax.f32 %v638_v16, 0.0 }
 0x1bf   :  { %v642_v15 = vmul.f32 %v641_v11, %v639_v13  ;;  %v643_v18 = vmul.f32 %v641_v11, %v640_v17 }
 0x1c1   :  { %644 = vadd.xlane.f32.xlu0 %v642_v15 }
 0x1c9   :  { %646 = vadd.xlane.f32.xlu0 %v643_v18 }
 0x234   :  { %v645_v19 = vpop.xlane.xlu0 %644 }
 0x235   :  { %v658_v21 = vmul.f32 %v645_v19, %v645_v19 }
 0x23c   :  { %v647_v20 = vpop.xlane.xlu0 %646 }
 0x23d   :  { %v650_v22 = vadd.f32 %v647_v20, %v645_v19  ;;  %v659_v24 = vmul.f32 %v647_v20, %v647_v20 }
 0x23f   :  { %v651_v25 = vrot.slane %v650_v22, 4  ;;  %v660_v26 = vadd.f32 %v659_v24, %v658_v21 }
 0x241   :  { %v652_v27 = vadd.f32 %v651_v25, %v650_v22  ;;  %v661_v28 = vrot.slane %v660_v26, 4 }
 0x243   :  { %v653_v29 = vrot.slane %v652_v27, 2  ;;  %v662_v30 = vadd.f32 %v661_v28, %v660_v26 }
 0x245   :  { %v654_v31 = vadd.f32 %v653_v29, %v652_v27  ;;  %v663_v23 = vrot.slane %v662_v30, 2 }
 0x247   :  { %v655_v32 = vrot.slane %v654_v31, 1  ;;  %v664_v33 = vadd.f32 %v663_v23, %v662_v30 }
 0x249   :  { %v656_v63 = vadd.f32 %v655_v32, %v654_v31  ;;  %v665_v42 = vrot.slane %v664_v33, 1 }
 0x24b   :  { %v657_v34 = vmul.f32 %v656_v63, %v1131_v14  ;;  %v666_v49 = vadd.f32 %v665_v42, %v664_v33 }
 0x24d   :  { %v667_v35 = vmul.f32 %v666_v49, %v1131_v14  ;;  %v668_v36 = vmul.f32 %v657_v34, %v657_v34 }
 0x24f   :  { %v669_v55 = vsub.f32 %v667_v35, %v668_v36 }
 0x251   :  { %v670_v37 = vadd.f32 1e-05, %v669_v55 }
 0x253   :  { %959 = vrsqrt.f32 %v670_v37  ;;  %vm677_vm12 = vweird.f32 %v670_v37 }
 0x259   :  { %v960_v38 = vpop.eup %959 }
 0x25a   :  { %v672_v39 = vmul.f32 %v960_v38, %v670_v37  ;;  %vm678_vm11 = vweird.f32 %v960_v38 }
 0x25b   :  { %vm679_vm13 = vmor %vm677_vm12, %vm678_vm11 }
 0x25c   :  { %v673_v40 = vmul.f32 %v960_v38, %v672_v39 }
 0x25e   :  { %v674_v41 = vmul.f32 0.5, %v673_v40 }
 0x260   :  { %v675_v43 = vsub.f32 1.5, %v674_v41 }
 0x262   :  { %v676_v45 = vmul.f32 %v960_v38, %v675_v43 }
 0x264   :  { %v680_v46 = vsel %vm679_vm13, %v960_v38, %v676_v45 }
 0x265   :  { %v681_v47 = vmul.f32 %v680_v46, %v648_v44 }
 0x267   :  { %v682_v50 = vmul.f32 %v681_v47, %v657_v34  ;;  %v684_v14 = vmul.f32 %v681_v47, %v645_v19  ;;  %v685_v52 = vmul.f32 %v681_v47, %v647_v20 }
 0x269   :  { %v683_v51 = vsub.f32 %v649_v48, %v682_v50 }
 0x26b   :  { %v686_v53 = vadd.f32 %v684_v14, %v683_v51  ;;  %v687_v54 = vadd.f32 %v685_v52, %v683_v51 }
 0x26d   :  { %v688_v56 = vmax.f32 %v686_v53, 0.0  ;;  %v689_v57 = vmax.f32 %v687_v54, 0.0 }
 0x26f   :  { %691 = vst.msk [vmem:[%s1160_s4] sm:$0xff] %vm690_vm14, %v688_v56 }
 0x270   :  { %692 = vst.msk [vmem:[%s1160_s4 + $0x8] sm:$0xff] %vm690_vm14, %v689_v57 }
 0x271   :  { %697 = vsyncpa [#allocation3], 1 }
 0x272   :  { %698 = vsyncpa [#allocation5], 1 }
 0x273   :  { %699 = vsyncpa [#allocation8], 1 }

</bundles_post_ra>
